<compile_context>
chip_gen: v7x
topology: tpu7x:2x2x1
jax: 0.10.0
libtpu: 0.0.40
codegen_flags: <defaults>
</compile_context>

<pallas_src>
import functools
import math

import jax
import jax.numpy as jnp
from jax.experimental import pallas as pl
from jax.experimental.pallas import tpu as pltpu

LANE = 128          # lane width for the packed params / padded logits
NEG_INF = -1e30     # fill for padded logit lanes (exp underflows to exactly 0)


def _round_up(v, m):
    return -(-v // m) * m


def _choose_tm(n, npg, cap=512):
    """Largest graph-aligned, sublane-legal row tile <= cap that divides n."""
    base = (npg * 8) // math.gcd(npg, 8)          # lcm(nodes_per_graph, 8)
    best, m = None, base
    while m <= min(n, cap):
        if n % m == 0:
            best = m
        m += base
    # Fallback: whole row dim as one tile (block dim == array dim is always legal).
    # TODO(synk): for very large N with awkward npg, pad N instead of falling back.
    return best if best is not None else n


def _choose_tk(n, cap=1024):
    """Largest 128-multiple reduction tile <= cap that divides n, else full width."""
    best, m = None, 128
    while m <= min(n, cap):
        if n % m == 0:
            best = m
        m += 128
    return best if best is not None else n


def _gin_kernel(a_ref, xk_ref, xi_ref, p_ref, o_ref, acc_ref, *,
                f_rows, gpt, npg, gpt_pad):
    """Grid = (row tiles i [parallel], adjacency-column tiles k [arbitrary, last])."""
    f32 = jnp.float32
    k = pl.program_id(1)

    # Static row offsets into the packed parameter slab (all multiples of 8).
    r_w2 = f_rows
    r_wf1 = f_rows + LANE
    r_wf2 = f_rows + 2 * LANE
    r_vec = f_rows + 3 * LANE

    @pl.when(k == 0)
    def _init():
        acc_ref[...] = jnp.zeros_like(acc_ref)
        o_ref[...] = jnp.zeros_like(o_ref)      # deterministic padded output rows

    w1 = p_ref[0:f_rows, :]                      # [F_pad, 128] f32 (cols >= H are zero)

    # ---- GINConv neighbour sum, reordered: stream A_tile @ (x_k @ w1) ----
    # xw1_k is tiny ([TK, F] @ [F, 128], f32); the dominant matmul runs on the MXU in
    # bf16 with f32 accumulation (adjacency 0/1 values are exact in bf16).
    xw1_k = jnp.dot(xk_ref[...], w1, preferred_element_type=f32)
    acc_ref[...] += jnp.dot(a_ref[...], xw1_k.astype(jnp.bfloat16),
                            preferred_element_type=f32)

    @pl.when(k == pl.num_programs(1) - 1)
    def _epilogue():
        w2 = p_ref[r_w2:r_w2 + LANE, :]
        wf1 = p_ref[r_wf1:r_wf1 + LANE, :]
        wf2 = p_ref[r_wf2:r_wf2 + LANE, :]
        b1 = p_ref[r_vec + 0:r_vec + 1, :]
        b2 = p_ref[r_vec + 1:r_vec + 2, :]
        bn_scale = p_ref[r_vec + 2:r_vec + 3, :]
        bn_shift = p_ref[r_vec + 3:r_vec + 4, :]
        bf1 = p_ref[r_vec + 4:r_vec + 5, :]
        bf2 = p_ref[r_vec + 5:r_vec + 6, :]      # -1e30 beyond out_dim

        # GIN self term, eps = 0: + x_i @ w1 (computed in f32).
        xw1_i = jnp.dot(xi_ref[...], w1, preferred_element_type=f32)

        # GIN MLP: Linear -> ReLU -> Linear, then the F.relu(conv) from forward().
        h = jnp.maximum(acc_ref[...] + xw1_i + b1, 0.0)
        h = jnp.dot(h, w2, preferred_element_type=f32) + b2
        h = jnp.maximum(h, 0.0)

        # BatchNorm1d (eval mode), pre-folded to an affine; pad lanes stay exactly 0.
        h = h * bn_scale + bn_shift

        # global_add_pool over this graph-aligned row tile: contiguous groups of `npg`
        # nodes -> reshape + sublane sum (no one-hot matmul, no iota mask).
        g = jnp.sum(h.reshape(gpt, npg, LANE), axis=1)       # [gpt, 128]

        # fc1 + ReLU  (dropout p=0.5 is identity in eval mode).
        g = jnp.maximum(jnp.dot(g, wf1, preferred_element_type=f32) + bf1, 0.0)

        # fc2 + log_softmax.  Padded logit lanes get bias -1e30, so exp() underflows to
        # exactly 0 and they do not perturb the softmax of the real out_dim lanes.
        logits = jnp.dot(g, wf2, preferred_element_type=f32) + bf2   # [gpt, 128]
        m = jnp.max(logits, axis=-1, keepdims=True)
        z = logits - m
        lse = jnp.log(jnp.sum(jnp.exp(z), axis=-1, keepdims=True))
        o_ref[0:gpt, :] = z - lse


def _pack_params(params, bn_scale, bn_shift, f_pad):
    """Single full-lane [rows, 128] f32 slab, built with one concatenate."""
    f32 = jnp.float32

    def col_pad(a, fill=0.0):
        a = jnp.asarray(a, f32)
        return jnp.pad(a, ((0, 0), (0, LANE - a.shape[1])), constant_values=fill)

    def row_pad(a, rows):
        return jnp.pad(a, ((0, rows - a.shape[0]), (0, 0)))

    blocks = [
        row_pad(col_pad(params["w1"]), f_pad),       # [F_pad, 128]
        row_pad(col_pad(params["w2"]), LANE),        # [128, 128]
        row_pad(col_pad(params["wf1"]), LANE),       # [128, 128]
        row_pad(col_pad(params["wf2"]), LANE),       # [128, 128]
        col_pad(params["b1"]),                       # 6 bias / affine rows
        col_pad(params["b2"]),
        col_pad(bn_scale),
        col_pad(bn_shift),
        col_pad(params["bf1"]),
        col_pad(params["bf2"], fill=NEG_INF),
        jnp.zeros((2, LANE), f32),                   # pad vector block to 8 rows
    ]
    return jnp.concatenate(blocks, axis=0)


def gin_graph_classification(adj, x, params, *, num_graphs, nodes_per_graph,
                             tm=None, tk=None):
    """Fused GIN graph-classification forward pass (eval mode).

    adj:  [N, N] dense adjacency, adj[i, j] = 1 iff edge j -> i
    x:    [N, F] node features (float32)
    params: dict of f32 weights/biases (weights stored [in_dim, out_dim]).
    Graphs are assumed contiguous with `nodes_per_graph` nodes each.
    """
    num_nodes, in_dim = x.shape
    hid = params["w1"].shape[1]
    out_dim = params["wf2"].shape[1]
    assert num_graphs * nodes_per_graph == num_nodes
    assert hid <= LANE and out_dim <= LANE and in_dim <= LANE

    if tm is None:
        tm = _choose_tm(num_nodes, nodes_per_graph)
    if tk is None:
        tk = _choose_tk(num_nodes)
    assert num_nodes % tm == 0 and tm % nodes_per_graph == 0
    assert tm % 8 == 0 or tm == num_nodes
    assert num_nodes % tk == 0
    assert tk % 128 == 0 or tk == num_nodes

    ni, nk = num_nodes // tm, num_nodes // tk
    gpt = tm // nodes_per_graph                      # graphs per row tile
    gpt_pad = _round_up(gpt, 8)                      # sublane-legal output block rows
    f_pad = _round_up(in_dim, 8)

    # --- wrapper-side folds (exact) ---
    bn_scale = params["bn_g"] * jax.lax.rsqrt(params["bn_v"] + 1e-5)
    bn_shift = params["bn_b"] - params["bn_m"] * bn_scale
    packed = _pack_params(params, bn_scale, bn_shift, f_pad)
    rows = packed.shape[0]

    # bf16 adjacency: 0/1 entries are exact; halves the dominant HBM stream.
    adj_bf16 = adj.astype(jnp.bfloat16)
    x_f32 = jnp.asarray(x, jnp.float32)
    if f_pad != in_dim:
        x_f32 = jnp.pad(x_f32, ((0, 0), (0, f_pad - in_dim)))

    kernel = functools.partial(_gin_kernel, f_rows=f_pad, gpt=gpt,
                               npg=nodes_per_graph, gpt_pad=gpt_pad)

    grid_spec = pltpu.PrefetchScalarGridSpec(
        num_scalar_prefetch=0,
        grid=(ni, nk),
        in_specs=[
            pl.BlockSpec((tm, tk), lambda i, k: (i, k)),       # adjacency tile (bf16)
            pl.BlockSpec((tk, f_pad), lambda i, k: (k, 0)),    # x rows for the K tile
            pl.BlockSpec((tm, f_pad), lambda i, k: (i, 0)),    # x rows for the self term
            pl.BlockSpec((rows, LANE), lambda i, k: (0, 0)),   # packed params (resident)
        ],
        out_specs=pl.BlockSpec((gpt_pad, LANE), lambda i, k: (i, 0)),
        scratch_shapes=[pltpu.VMEM((tm, LANE), jnp.float32)],  # f32 accumulator
    )

    # VMEM budget: double-buffered inputs/outputs + accumulator, with margin.
    est_vmem = (2 * tm * tk * 2 + 2 * tk * f_pad * 4 + 2 * tm * f_pad * 4
                + 2 * rows * LANE * 4 + 2 * gpt_pad * LANE * 4 + tm * LANE * 4)
    vmem_limit = int(min(64 * 1024 * 1024, max(2 * est_vmem, 16 * 1024 * 1024)))

    cost = pl.CostEstimate(
        flops=(2 * num_nodes * num_nodes * LANE            # A @ xw1 stream
               + 2 * ni * num_nodes * f_pad * LANE         # per-row-tile xw1
               + 2 * num_nodes * LANE * LANE               # w2 epilogue
               + 4 * ni * gpt_pad * LANE * LANE),          # fc1 + fc2
        transcendentals=ni * gpt_pad * (LANE + 1),
        bytes_accessed=(num_nodes * num_nodes * 2
                        + (ni + 1) * num_nodes * f_pad * 4
                        + rows * LANE * 4
                        + ni * gpt_pad * LANE * 4),
    )

    out = pl.pallas_call(
        kernel,
        out_shape=jax.ShapeDtypeStruct((ni * gpt_pad, LANE), jnp.float32),
        grid_spec=grid_spec,
        compiler_params=pltpu.CompilerParams(
            dimension_semantics=("parallel", "arbitrary"),
            vmem_limit_bytes=vmem_limit),
        cost_estimate=cost,
    )(adj_bf16, x_f32, x_f32, packed)

    # Drop padded graph rows / padded logit lanes.
    out = out.reshape(ni, gpt_pad, LANE)[:, :gpt, :].reshape(ni * gpt, LANE)
    return out[:num_graphs, :out_dim]


def reference_forward(adj, x, pool, params):
    """Pure-f32 JAX reference of the original formulation."""
    agg = x + adj @ x
    h = jnp.maximum(agg @ params["w1"] + params["b1"], 0.0)
    h = h @ params["w2"] + params["b2"]
    h = jnp.maximum(h, 0.0)
    h = (h - params["bn_m"]) / jnp.sqrt(params["bn_v"] + 1e-5) * params["bn_g"] + params["bn_b"]
    g = pool @ h
    g = jnp.maximum(g @ params["wf1"] + params["bf1"], 0.0)
    logits = g @ params["wf2"] + params["bf2"]
    return jax.nn.log_softmax(logits, axis=-1)


def reference_forward_mxu_dtype(adj, x, pool, params):
    """Reference matching the kernel's dtype policy (bf16 MXU stream, f32 elsewhere)."""
    xw1 = x @ params["w1"]
    neigh = jnp.dot(adj.astype(jnp.bfloat16), xw1.astype(jnp.bfloat16),
                    preferred_element_type=jnp.float32)
    h = jnp.maximum(neigh + xw1 + params["b1"], 0.0)
    h = h @ params["w2"] + params["b2"]
    h = jnp.maximum(h, 0.0)
    h = (h - params["bn_m"]) / jnp.sqrt(params["bn_v"] + 1e-5) * params["bn_g"] + params["bn_b"]
    g = pool @ h
    g = jnp.maximum(g @ params["wf1"] + params["bf1"], 0.0)
    logits = g @ params["wf2"] + params["bf2"]
    return jax.nn.log_softmax(logits, axis=-1)


if __name__ == "__main__":
    # Small shapes consistent with the module's forward():
    #   input_dim=8, hidden_dim=32, output_dim=4, num_layers=3 (only layer 0 runs, see note),
    #   N=16 nodes split into G=2 graphs of 8 nodes each.
    input_dim, hidden_dim, output_dim = 8, 32, 4
    num_nodes, num_graphs = 16, 2
    nodes_per_graph = num_nodes // num_graphs

    key = jax.random.PRNGKey(0)
    ks = jax.random.split(key, 6)

    def dense_init(k, fan_in, fan_out):
        bound = 1.0 / jnp.sqrt(fan_in)
        kw, kb = jax.random.split(k)
        w = jax.random.uniform(kw, (fan_in, fan_out), jnp.float32, -bound, bound)
        b = jax.random.uniform(kb, (1, fan_out), jnp.float32, -bound, bound)
        return w, b

    w1, b1 = dense_init(ks[0], input_dim, hidden_dim)      # GIN MLP Linear 1
    w2, b2 = dense_init(ks[1], hidden_dim, hidden_dim)     # GIN MLP Linear 2
    wf1, bf1 = dense_init(ks[2], hidden_dim, hidden_dim)   # fc1
    wf2, bf2 = dense_init(ks[3], hidden_dim, output_dim)   # fc2

    params = dict(
        w1=w1, b1=b1, w2=w2, b2=b2,
        bn_g=jnp.ones((1, hidden_dim), jnp.float32),   # BatchNorm1d gamma
        bn_b=jnp.zeros((1, hidden_dim), jnp.float32),  # BatchNorm1d beta
        bn_m=jnp.zeros((1, hidden_dim), jnp.float32),  # running_mean
        bn_v=jnp.ones((1, hidden_dim), jnp.float32),   # running_var
        wf1=wf1, bf1=bf1, wf2=wf2, bf2=bf2,
    )

    x = jax.random.normal(ks[4], (num_nodes, input_dim), jnp.float32)

    # edge_index: ring within each 8-node graph, both directions (E = 32 edges).
    src_list, dst_list = [], []
    for g in range(num_graphs):
        base = g * nodes_per_graph
        for i in range(nodes_per_graph):
            a, b = base + i, base + (i + 1) % nodes_per_graph
            src_list += [a, b]
            dst_list += [b, a]
    edge_index = jnp.array([src_list, dst_list], dtype=jnp.int32)  # [2, E]

    # Densify edge_index into adjacency A[i, j] = 1 iff edge j -> i (glue in plain JAX).
    adj = jnp.zeros((num_nodes, num_nodes), jnp.float32).at[edge_index[1], edge_index[0]].set(1.0)

    # batch vector -> one-hot pooling matrix [G, N] (reference only).
    batch = jnp.repeat(jnp.arange(num_graphs, dtype=jnp.int32), nodes_per_graph)
    pool = (batch[None, :] == jnp.arange(num_graphs, dtype=jnp.int32)[:, None]).astype(jnp.float32)

    ref_f32 = reference_forward(adj, x, pool, params)
    ref_mxu = reference_forward_mxu_dtype(adj, x, pool, params)

    # Run once with the auto-picked single row tile (grid (1,1)) and once with tm=8
    # (grid (2,1)) to exercise the parallel row-tile axis and per-tile pooling path.
    for tm in (None, 8):
        fn = jax.jit(functools.partial(
            gin_graph_classification,
            num_graphs=num_graphs, nodes_per_graph=nodes_per_graph, tm=tm))
        out = jax.block_until_ready(fn(adj, x, params))
        assert out.shape == (num_graphs, output_dim)
        # Tight check against the dtype-matched reference (bf16 MXU stream).
        assert jnp.allclose(out, ref_mxu, atol=2e-3, rtol=2e-3), \
            f"Pallas kernel mismatch vs dtype-matched reference (tm={tm})"
        # Loose sanity check against the pure-f32 reference (bf16 rounding only).
        assert jnp.allclose(out, ref_f32, atol=3e-2, rtol=3e-2), \
            f"Pallas kernel drifted from f32 reference (tm={tm})"

    print("KERNEL_OK")
</pallas_src>

<mosaic_0001>
module attributes {stable_mosaic.version = 11 : i64} {
  func.func @_gin_kernel(%arg0: i32, %arg1: i32, %arg2: memref<16x16xbf16, #tpu.memory_space<vmem>>, %arg3: memref<16x8xf32, #tpu.memory_space<vmem>>, %arg4: memref<16x8xf32, #tpu.memory_space<vmem>>, %arg5: memref<400x128xf32, #tpu.memory_space<vmem>>, %arg6: memref<8x128xf32, #tpu.memory_space<vmem>>, %arg7: memref<16x128xf32, #tpu.memory_space<vmem>>) attributes {dimension_semantics = [#tpu.dimension_semantics<parallel>, #tpu.dimension_semantics<arbitrary>], iteration_bounds = array<i64: 1, 1>, scalar_prefetch = 0 : i64, scratch_operands = 1 : i64, tpu.core_type = #tpu.core_type<tc>, window_params = [{transform_indices = @transform_0, window_bounds = array<i64: 16, 16>}, {transform_indices = @transform_1, window_bounds = array<i64: 16, 8>}, {transform_indices = @transform_2, window_bounds = array<i64: 16, 8>}, {pipeline_mode = #tpu.pipeline_mode<synchronous>, transform_indices = @transform_3, window_bounds = array<i64: 400, 128>}, {transform_indices = @transform_4, window_bounds = array<i64: 8, 128>}]} {
    %c0_i32 = arith.constant 0 : i32
    %0 = arith.cmpi eq, %arg1, %c0_i32 : i32
    %1 = arith.extui %0 : i1 to i32
    %c0_i32_0 = arith.constant 0 : i32
    %2 = arith.cmpi ne, %1, %c0_i32_0 : i32
    scf.if %2 {
      %cst_13 = arith.constant 0.000000e+00 : f32
      %15 = vector.broadcast %cst_13 : f32 to vector<16x128xf32>
      %c0_14 = arith.constant 0 : index
      %c0_15 = arith.constant 0 : index
      %16 = vector.load %arg7[%c0_14, %c0_15] : memref<16x128xf32, #tpu.memory_space<vmem>>, vector<16x128xf32>
      tpu.vector_store %arg7[%c0_14, %c0_15], %15 {strides = array<i32>} : memref<16x128xf32, #tpu.memory_space<vmem>>, vector<16x128xf32>,
      %cst_16 = arith.constant 0.000000e+00 : f32
      %17 = vector.broadcast %cst_16 : f32 to vector<8x128xf32>
      %c0_17 = arith.constant 0 : index
      %c0_18 = arith.constant 0 : index
      %18 = vector.load %arg6[%c0_17, %c0_18] : memref<8x128xf32, #tpu.memory_space<vmem>>, vector<8x128xf32>
      tpu.vector_store %arg6[%c0_17, %c0_18], %17 {strides = array<i32>} : memref<8x128xf32, #tpu.memory_space<vmem>>, vector<8x128xf32>,
    } else {
    }
    %c0 = arith.constant 0 : index
    %c0_1 = arith.constant 0 : index
    %3 = vector.load %arg5[%c0, %c0_1] : memref<400x128xf32, #tpu.memory_space<vmem>>, vector<8x128xf32>
    %c0_2 = arith.constant 0 : index
    %c0_3 = arith.constant 0 : index
    %4 = vector.load %arg3[%c0_2, %c0_3] : memref<16x8xf32, #tpu.memory_space<vmem>>, vector<16x8xf32>
    %cst = arith.constant dense<0.000000e+00> : vector<16x128xf32>
    %5 = tpu.matmul %4, %3, %cst {dimension_numbers = #tpu.dot_dimension_numbers<[1], [0], [0], [1], [0, 0, 1, 1], [], []>} : vector<16x8xf32>, vector<8x128xf32>, vector<16x128xf32> -> vector<16x128xf32>
    %c0_4 = arith.constant 0 : index
    %c0_5 = arith.constant 0 : index
    %6 = vector.load %arg7[%c0_4, %c0_5] : memref<16x128xf32, #tpu.memory_space<vmem>>, vector<16x128xf32>
    %c0_6 = arith.constant 0 : index
    %c0_7 = arith.constant 0 : index
    %7 = vector.load %arg2[%c0_6, %c0_7] : memref<16x16xbf16, #tpu.memory_space<vmem>>, vector<16x16xbf16>
    %8 = arith.truncf %5 : vector<16x128xf32> to vector<16x128xbf16>
    %cst_8 = arith.constant dense<0.000000e+00> : vector<16x128xf32>
    %9 = tpu.matmul %7, %8, %cst_8 {dimension_numbers = #tpu.dot_dimension_numbers<[1], [0], [0], [1], [0, 0, 1, 1], [], []>} : vector<16x16xbf16>, vector<16x128xbf16>, vector<16x128xf32> -> vector<16x128xf32>
    %10 = arith.addf %6, %9 : vector<16x128xf32>
    %c0_9 = arith.constant 0 : index
    %c0_10 = arith.constant 0 : index
    %11 = vector.load %arg7[%c0_9, %c0_10] : memref<16x128xf32, #tpu.memory_space<vmem>>, vector<16x128xf32>
    tpu.vector_store %arg7[%c0_9, %c0_10], %10 {strides = array<i32>} : memref<16x128xf32, #tpu.memory_space<vmem>>, vector<16x128xf32>,
    %c0_i32_11 = arith.constant 0 : i32
    %12 = arith.cmpi eq, %arg1, %c0_i32_11 : i32
    %13 = arith.extui %12 : i1 to i32
    %c0_i32_12 = arith.constant 0 : i32
    %14 = arith.cmpi ne, %13, %c0_i32_12 : i32
    scf.if %14 {
      %c8 = arith.constant 8 : index
      %c0_13 = arith.constant 0 : index
      %15 = vector.load %arg5[%c8, %c0_13] : memref<400x128xf32, #tpu.memory_space<vmem>>, vector<128x128xf32>
      %c136 = arith.constant 136 : index
      %c0_14 = arith.constant 0 : index
      %16 = vector.load %arg5[%c136, %c0_14] : memref<400x128xf32, #tpu.memory_space<vmem>>, vector<128x128xf32>
      %c264 = arith.constant 264 : index
      %c0_15 = arith.constant 0 : index
      %17 = vector.load %arg5[%c264, %c0_15] : memref<400x128xf32, #tpu.memory_space<vmem>>, vector<128x128xf32>
      %c392 = arith.constant 392 : index
      %c0_16 = arith.constant 0 : index
      %18 = vector.load %arg5[%c392, %c0_16] : memref<400x128xf32, #tpu.memory_space<vmem>>, vector<1x128xf32>
      %c393 = arith.constant 393 : index
      %c0_17 = arith.constant 0 : index
      %19 = vector.load %arg5[%c393, %c0_17] : memref<400x128xf32, #tpu.memory_space<vmem>>, vector<1x128xf32>
      %c394 = arith.constant 394 : index
      %c0_18 = arith.constant 0 : index
      %20 = vector.load %arg5[%c394, %c0_18] : memref<400x128xf32, #tpu.memory_space<vmem>>, vector<1x128xf32>
      %c395 = arith.constant 395 : index
      %c0_19 = arith.constant 0 : index
      %21 = vector.load %arg5[%c395, %c0_19] : memref<400x128xf32, #tpu.memory_space<vmem>>, vector<1x128xf32>
      %c396 = arith.constant 396 : index
      %c0_20 = arith.constant 0 : index
      %22 = vector.load %arg5[%c396, %c0_20] : memref<400x128xf32, #tpu.memory_space<vmem>>, vector<1x128xf32>
      %c397 = arith.constant 397 : index
      %c0_21 = arith.constant 0 : index
      %23 = vector.load %arg5[%c397, %c0_21] : memref<400x128xf32, #tpu.memory_space<vmem>>, vector<1x128xf32>
      %c0_22 = arith.constant 0 : index
      %c0_23 = arith.constant 0 : index
      %24 = vector.load %arg4[%c0_22, %c0_23] : memref<16x8xf32, #tpu.memory_space<vmem>>, vector<16x8xf32>
      %cst_24 = arith.constant dense<0.000000e+00> : vector<16x128xf32>
      %25 = tpu.matmul %24, %3, %cst_24 {dimension_numbers = #tpu.dot_dimension_numbers<[1], [0], [0], [1], [0, 0, 1, 1], [], []>} : vector<16x8xf32>, vector<8x128xf32>, vector<16x128xf32> -> vector<16x128xf32>
      %c0_25 = arith.constant 0 : index
      %c0_26 = arith.constant 0 : index
      %26 = vector.load %arg7[%c0_25, %c0_26] : memref<16x128xf32, #tpu.memory_space<vmem>>, vector<16x128xf32>
      %27 = arith.addf %26, %25 : vector<16x128xf32>
      %28 = vector.broadcast %18 : vector<1x128xf32> to vector<16x128xf32>
      %29 = arith.addf %27, %28 : vector<16x128xf32>
      %cst_27 = arith.constant 0.000000e+00 : f32
      %30 = vector.broadcast %cst_27 : f32 to vector<16x128xf32>
      %31 = arith.maximumf %29, %30 : vector<16x128xf32>
      %cst_28 = arith.constant dense<0.000000e+00> : vector<16x128xf32>
      %32 = tpu.matmul %31, %15, %cst_28 {dimension_numbers = #tpu.dot_dimension_numbers<[1], [0], [0], [1], [0, 0, 1, 1], [], []>} : vector<16x128xf32>, vector<128x128xf32>, vector<16x128xf32> -> vector<16x128xf32>
      %33 = vector.broadcast %19 : vector<1x128xf32> to vector<16x128xf32>
      %34 = arith.addf %32, %33 : vector<16x128xf32>
      %cst_29 = arith.constant 0.000000e+00 : f32
      %35 = vector.broadcast %cst_29 : f32 to vector<16x128xf32>
      %36 = arith.maximumf %34, %35 : vector<16x128xf32>
      %37 = vector.broadcast %20 : vector<1x128xf32> to vector<16x128xf32>
      %38 = arith.mulf %36, %37 : vector<16x128xf32>
      %39 = vector.broadcast %21 : vector<1x128xf32> to vector<16x128xf32>
      %40 = arith.addf %38, %39 : vector<16x128xf32>
      %41 = vector.shape_cast %40 : vector<16x128xf32> to vector<2x8x128xf32>
      %cst_30 = arith.constant dense<0.000000e+00> : vector<2x128xf32>
      %42 = vector.multi_reduction <add>, %41, %cst_30 [1] : vector<2x8x128xf32> to vector<2x128xf32>
      %cst_31 = arith.constant dense<0.000000e+00> : vector<2x128xf32>
      %43 = tpu.matmul %42, %16, %cst_31 {dimension_numbers = #tpu.dot_dimension_numbers<[1], [0], [0], [1], [0, 0, 1, 1], [], []>} : vector<2x128xf32>, vector<128x128xf32>, vector<2x128xf32> -> vector<2x128xf32>
      %44 = vector.broadcast %22 : vector<1x128xf32> to vector<2x128xf32>
      %45 = arith.addf %43, %44 : vector<2x128xf32>
      %cst_32 = arith.constant 0.000000e+00 : f32
      %46 = vector.broadcast %cst_32 : f32 to vector<2x128xf32>
      %47 = arith.maximumf %45, %46 : vector<2x128xf32>
      %cst_33 = arith.constant dense<0.000000e+00> : vector<2x128xf32>
      %48 = tpu.matmul %47, %17, %cst_33 {dimension_numbers = #tpu.dot_dimension_numbers<[1], [0], [0], [1], [0, 0, 1, 1], [], []>} : vector<2x128xf32>, vector<128x128xf32>, vector<2x128xf32> -> vector<2x128xf32>
      %49 = vector.broadcast %23 : vector<1x128xf32> to vector<2x128xf32>
      %50 = arith.addf %48, %49 : vector<2x128xf32>
      %cst_34 = arith.constant dense<0xFF800000> : vector<2xf32>
      %51 = vector.multi_reduction <maximumf>, %50, %cst_34 [1] : vector<2x128xf32> to vector<2xf32>
      %52 = vector.shape_cast %51 : vector<2xf32> to vector<2x1xf32>
      %53 = vector.broadcast %52 : vector<2x1xf32> to vector<2x128xf32>
      %54 = arith.subf %50, %53 : vector<2x128xf32>
      %55 = math.exp %54 : vector<2x128xf32>
      %cst_35 = arith.constant dense<0.000000e+00> : vector<2xf32>
      %56 = vector.multi_reduction <add>, %55, %cst_35 [1] : vector<2x128xf32> to vector<2xf32>
      %57 = vector.shape_cast %56 : vector<2xf32> to vector<2x1xf32>
      %58 = math.log %57 : vector<2x1xf32>
      %59 = vector.broadcast %58 : vector<2x1xf32> to vector<2x128xf32>
      %60 = arith.subf %54, %59 : vector<2x128xf32>
      %c0_36 = arith.constant 0 : index
      %c0_37 = arith.constant 0 : index
      %61 = vector.load %arg6[%c0_36, %c0_37] : memref<8x128xf32, #tpu.memory_space<vmem>>, vector<2x128xf32>
      tpu.vector_store %arg6[%c0_36, %c0_37], %60 {strides = array<i32>} : memref<8x128xf32, #tpu.memory_space<vmem>>, vector<2x128xf32>,
    } else {
    }
    return
  }
  func.func @transform_0(%arg0: i32, %arg1: i32) -> (i32, i32) {
    %c0_i32 = arith.constant 0 : i32
    return %arg0, %arg1 : i32, i32
  }
  func.func @transform_1(%arg0: i32, %arg1: i32) -> (i32, i32) {
    %c0_i32 = arith.constant 0 : i32
    %c0_i32_0 = arith.constant 0 : i32
    return %arg1, %c0_i32 : i32, i32
  }
  func.func @transform_2(%arg0: i32, %arg1: i32) -> (i32, i32) {
    %c0_i32 = arith.constant 0 : i32
    %c0_i32_0 = arith.constant 0 : i32
    return %arg0, %c0_i32 : i32, i32
  }
  func.func @transform_3(%arg0: i32, %arg1: i32) -> (i32, i32) {
    %c0_i32 = arith.constant 0 : i32
    %c0_i32_0 = arith.constant 0 : i32
    %c0_i32_1 = arith.constant 0 : i32
    return %c0_i32, %c0_i32_0 : i32, i32
  }
  func.func @transform_4(%arg0: i32, %arg1: i32) -> (i32, i32) {
    %c0_i32 = arith.constant 0 : i32
    %c0_i32_0 = arith.constant 0 : i32
    return %arg0, %c0_i32 : i32, i32
  }
}

</mosaic_0001>

<bundles_post_ra>
// kernel: gin_graph_classification.1
= control target key start
LH: loop header
LB: loop body
LE: loop exit
PB: predicated region body
PF: predicated region fallthrough
CT: control target
= control target key end

     0   :  { %vm28_vm0 = vcmask 64512   ;;  %v879_v3 = vmov 0.0   ;;  %vm880_vm1 = vmmov 0   ;;  %vm120_vm2 = vcmask 130048   ;;  %s1121_s3 = inlined_call_operand.vmem [shape: f32[400,128], index: 3, kind: input, shape index: {}]   ;;  %s1122_s1 = inlined_call_operand.vmem [shape: f32[16,8], index: 1, kind: input, shape index: {}, may-alias: {1,2}]   ;;  %s1123_s0 = inlined_call_operand.vmem [shape: bf16[16,16], index: 0, kind: input, shape index: {}]   ;;  %s1124_s2 = inlined_call_operand.vmem [shape: f32[16,8], index: 2, kind: input, shape index: {}, may-alias: {1,2}]   ;;  %s1125_s4 = inlined_call_operand.vmem [shape: f32[8,128], index: 4, kind: output, shape index: {}]  }
   0x1   :  { %v25_v0 = vld [vmem:[%s1121_s3] sm:$0xff]  ;;  %v27_v2 = vld [vmem:[%s1122_s1 + $0x8] sm:$0xff]  ;;  %v173_v5 = vld [vmem:[%s1121_s3 + $0x10] sm:$0xff]  ;;  %v881_v37 = vmov 0.0|0.0   ;;  %vm432_vm3 = vcmask 1041409   ;;  %vm580_vm4 = vcmask 1041408   ;;  %24 = vst [vmem:[%s1125_s4] sm:$0xff] %v879_v3 }
   0x2   :  { %v26_v1 = vld [vmem:[%s1122_s1] sm:$0xff]  ;;  %670 = vmatprep.subr.mxu0 %v25_v0  ;;  %v172_v4 = vld [vmem:[%s1121_s3 + $0x8] sm:$0xff]  ;;  %v174_v6 = vld [vmem:[%s1121_s3 + $0x18] sm:$0xff] }
   0x3   :  { %672 = vmatprep.mubr.msk.f32.mxu0 %vm28_vm0, %v26_v1  ;;  %671 = vmatpush3.msra.mxu0 %v25_v0  ;;  %v791_v7 = vpack.c.bf16 %v173_v5, %v172_v4  ;;  %v175_v8 = vld [vmem:[%s1121_s3 + $0x20] sm:$0xff]  ;;  %v176_v10 = vld [vmem:[%s1121_s3 + $0x28] sm:$0xff]  ;;  %v177_v11 = vld [vmem:[%s1121_s3 + $0x30] sm:$0xff] }
   0x4   :  { %673 = vmatmul.mubr.msk.f32.vlgmr.msra.gmra.mrb[0].mxu0 %vm28_vm0, %v27_v2  ;;  %675 = vmatprep.subr.bf16.mxu0 %v879_v3  ;;  %v795_v9 = vpack.c.bf16 %v175_v8, %v174_v6  ;;  %v799_v12 = vpack.c.bf16 %v177_v11, %v176_v10  ;;  %v178_v13 = vld [vmem:[%s1121_s3 + $0x38] sm:$0xff]  ;;  %v179_v14 = vld [vmem:[%s1121_s3 + $0x40] sm:$0xff]  ;;  %v227_v21 = vld [vmem:[%s1124_s2 + $0x8] sm:$0xff] }
   0x5   :  { %677 = vmatprep.mubr.msk.bf16.mxu0 %vm880_vm1, %v879_v3  ;;  %792 = vmatprep.subr.bf16.mxu1 %v791_v7  ;;  %v803_v15 = vpack.c.bf16 %v179_v14, %v178_v13  ;;  %v874_v19 = vld [vmem:[%s1123_s0] sm:$0xff]   ;;  %v180_v22 = vld [vmem:[%s1121_s3 + $0x48] sm:$0xff]  ;;  %v181_v23 = vld [vmem:[%s1121_s3 + $0x50] sm:$0xff] }
   0x6   :  { %794 = vmatpush3.bf16.msra.mxu1 %v791_v7  ;;  %v226_v20 = vld [vmem:[%s1124_s2] sm:$0xff]  ;;  %v807_v24 = vpack.c.bf16 %v181_v23, %v180_v22  ;;  %v182_v25 = vld [vmem:[%s1121_s3 + $0x58] sm:$0xff]  ;;  %v184_v28 = vld [vmem:[%s1121_s3 + $0x68] sm:$0xff] }
   0x7   :  { %796 = vmatprep.subr.bf16.mxu1 %v795_v9  ;;  %v183_v26 = vld [vmem:[%s1121_s3 + $0x60] sm:$0xff]  ;;  %v185_v29 = vld [vmem:[%s1121_s3 + $0x70] sm:$0xff]  ;;  %v186_v31 = vld [vmem:[%s1121_s3 + $0x78] sm:$0xff] }
   0x8   :  { %v811_v27 = vpack.c.bf16 %v183_v26, %v182_v25  ;;  %v815_v30 = vpack.c.bf16 %v185_v29, %v184_v28  ;;  %v187_v32 = vld [vmem:[%s1121_s3 + $0x80] sm:$0xff]  ;;  %v188_v34 = vld [vmem:[%s1121_s3 + $0x88] sm:$0xff]  ;;  %v189_v35 = vld [vmem:[%s1121_s3 + $0x90] sm:$0xff] }
   0x9   :  { %v819_v33 = vpack.c.bf16 %v187_v32, %v186_v31  ;;  %v190_v36 = vld [vmem:[%s1121_s3 + $0x98] sm:$0xff]  ;;  %v824_v38 = vpack.c.bf16 %v189_v35, %v188_v34  ;;  %v191_v39 = vld [vmem:[%s1121_s3 + $0xa0] sm:$0xff]  ;;  %v604_v46 = vld [vmem:[%s1121_s3 + $0x188] ss:$0 sm:$0xff] }
   0xa   :  { %798 = vmatpush3.bf16.msra.mxu1 %v795_v9  ;;  %v827_v40 = vpack.c.bf16 %v191_v39, %v190_v36  ;;  %v192_v54 = vld [vmem:[%s1121_s3 + $0xa8] sm:$0xff]  ;;  %v193_v55 = vld [vmem:[%s1121_s3 + $0xb0] sm:$0xff]  ;;  %v194_v57 = vld [vmem:[%s1121_s3 + $0xb8] sm:$0xff] }
   0xb   :  { %800 = vmatprep.subr.bf16.mxu1 %v799_v12  ;;  %v830_v56 = vpack.c.bf16 %v193_v55, %v192_v54  ;;  %v195_v58 = vld [vmem:[%s1121_s3 + $0xc0] sm:$0xff]  ;;  %v196_v60 = vld [vmem:[%s1121_s3 + $0xc8] sm:$0xff]  ;;  %v197_v61 = vld [vmem:[%s1121_s3 + $0xd0] sm:$0xff] }
   0xc   :  { %v833_v59 = vpack.c.bf16 %v195_v58, %v194_v57  ;;  %v836_v62 = vpack.c.bf16 %v197_v61, %v196_v60  ;;  %v198_v63 = vld [vmem:[%s1121_s3 + $0xd8] sm:$0xff]  ;;  %v200_v2 = vld [vmem:[%s1121_s3 + $0xe8] sm:$0xff]  ;;  %v201_v4 = vld [vmem:[%s1121_s3 + $0xf0] sm:$0xff] }
   0xd   :  { %v842_v5 = vpack.c.bf16 %v201_v4, %v200_v2  ;;  %v202_v6 = vld [vmem:[%s1121_s3 + $0xf8] sm:$0xff]  ;;  %v203_v7 = vld [vmem:[%s1121_s3 + $0x100] sm:$0xff]  ;;  %v204_v9 = vld [vmem:[%s1121_s3 + $0x108] sm:$0xff] }
   0xe   :  { %802 = vmatpush3.bf16.msra.mxu1 %v799_v12  ;;  %v845_v8 = vpack.c.bf16 %v203_v7, %v202_v6  ;;  %v205_v10 = vld [vmem:[%s1121_s3 + $0x110] sm:$0xff]  ;;  %v206_v11 = vld [vmem:[%s1121_s3 + $0x118] sm:$0xff]  ;;  %v207_v13 = vld [vmem:[%s1121_s3 + $0x120] sm:$0xff] }
   0xf   :  { %804 = vmatprep.subr.bf16.mxu1 %v803_v15  ;;  %v848_v12 = vpack.c.bf16 %v205_v10, %v204_v9  ;;  %v851_v14 = vpack.c.bf16 %v207_v13, %v206_v11  ;;  %v213_v22 = vld [vmem:[%s1121_s3 + $0x150] sm:$0xff]  ;;  %v215_v25 = vld [vmem:[%s1121_s3 + $0x160] sm:$0xff]  ;;  %v606_v34 = vld [vmem:[%s1121_s3 + $0x18a] ss:$0 sm:$0xff] }
  0x10   :  { %v217_v28 = vld [vmem:[%s1121_s3 + $0x170] sm:$0xff]  ;;  %v219_v57 = vld [vmem:[%s1121_s3 + $0x180] sm:$0xff] }
  0x12   :  { %806 = vmatpush3.bf16.msra.mxu1 %v803_v15  ;;  %v208_v15 = vld [vmem:[%s1121_s3 + $0x128] sm:$0xff] }
  0x13   :  { %808 = vmatprep.subr.bf16.mxu1 %v807_v24 }
  0x16   :  { %810 = vmatpush3.bf16.msra.mxu1 %v807_v24  ;;  %v214_v24 = vld [vmem:[%s1121_s3 + $0x158] sm:$0xff] }
  0x17   :  { %812 = vmatprep.subr.bf16.mxu1 %v811_v27  ;;  %v863_v26 = vpack.c.bf16 %v215_v25, %v214_v24 }
  0x1a   :  { %814 = vmatpush3.bf16.msra.mxu1 %v811_v27  ;;  %v216_v27 = vld [vmem:[%s1121_s3 + $0x168] sm:$0xff] }
  0x1b   :  { %816 = vmatprep.subr.bf16.mxu1 %v815_v30  ;;  %v866_v29 = vpack.c.bf16 %v217_v28, %v216_v27 }
  0x1e   :  { %818 = vmatpush3.bf16.msra.mxu1 %v815_v30  ;;  %v605_v30 = vld [vmem:[%s1121_s3 + $0x189] ss:$0 sm:$0xff] }
  0x1f   :  { %820 = vmatprep.subr.bf16.mxu1 %v819_v33 }
  0x22   :  { %822 = vmatpush3.bf16.msra.mxu1 %v819_v33 }
  0x23   :  { %847 = vmatprep.subr.bf16.mxu1 %v881_v37 }
  0xd7   :  { %v674_v16 = vpop.f32.mrb[0].mxu0 }
  0xd8   :  { %v101_v17 = vpop.f32.mrb[1].mxu0 }
  0xd9   :  { %v114_v18 = vpack.c.bf16 %v674_v16, %v101_v17  ;;  %v209_v16 = vld [vmem:[%s1121_s3 + $0x130] sm:$0xff] }
  0xda   :  { %v854_v17 = vpack.c.bf16 %v209_v16, %v208_v15 }
  0xdb   :  { %676 = vmatpush3.bf16.msra.mxu0 %v114_v18  ;;  %v210_v18 = vld [vmem:[%s1121_s3 + $0x138] sm:$0xff] }
  0xdc   :  { %681 = vmatprep.subr.mxu0 %v25_v0 }
  0xde   :  { %678 = vmatmul.mubr.msk.bf16.vlgmr.msra.gmra.mrb[4].mxu0 %vm120_vm2, %v874_v19  ;;  %v211_v19 = vld [vmem:[%s1121_s3 + $0x140] sm:$0xff] }
  0xdf   :  { %682 = vmatpush3.msra.mxu0 %v25_v0  ;;  %683 = vmatprep.mubr.msk.f32.mxu0 %vm28_vm0, %v226_v20  ;;  %v199_v0 = vld [vmem:[%s1121_s3 + $0xe0] sm:$0xff]  ;;  %v857_v20 = vpack.c.bf16 %v211_v19, %v210_v18 }
  0xe0   :  { %823 = vmatprep.subr.bf16.mxu0 %v881_v37  ;;  %v839_v1 = vpack.c.bf16 %v199_v0, %v198_v63  ;;  %v609_v0 = vld [vmem:[%s1121_s3 + $0x18d] ss:$0 sm:$0xff] }
  0xe6   :  { %684 = vmatmul.mubr.msk.f32.vlgmr.msra.gmra.mrb[2].mxu0 %vm28_vm0, %v227_v21  ;;  %v212_v21 = vld [vmem:[%s1121_s3 + $0x148] sm:$0xff] }
  0xe7   :  { %753 = vmatprep.mubr.msk.f32.mxu0 %vm880_vm1, %v879_v3  ;;  %825 = vmatpush3.bf16.msra.mxu0 %v824_v38  ;;  %v860_v23 = vpack.c.bf16 %v213_v22, %v212_v21  ;;  %v607_v38 = vld [vmem:[%s1121_s3 + $0x18b] ss:$0 sm:$0xff] }
  0xe8   :  { %826 = vmatprep.subr.bf16.mxu0 %v881_v37 }
  0xeb   :  { %828 = vmatpush3.bf16.msra.mxu0 %v827_v40 }
  0xec   :  { %829 = vmatprep.subr.bf16.mxu0 %v881_v37 }
  0xef   :  { %831 = vmatpush3.bf16.msra.mxu0 %v830_v56  ;;  %v218_v56 = vld [vmem:[%s1121_s3 + $0x178] sm:$0xff] }
  0xf0   :  { %832 = vmatprep.subr.bf16.mxu0 %v881_v37  ;;  %v869_v58 = vpack.c.bf16 %v219_v57, %v218_v56 }
  0xf3   :  { %834 = vmatpush3.bf16.msra.mxu0 %v833_v59  ;;  %v608_v59 = vld [vmem:[%s1121_s3 + $0x18c] ss:$0 sm:$0xff] }
  0xf4   :  { %835 = vmatprep.subr.bf16.mxu0 %v881_v37 }
  0xf7   :  { %837 = vmatpush3.bf16.msra.mxu0 %v836_v62 }
  0xf8   :  { %838 = vmatprep.subr.bf16.mxu0 %v881_v37 }
  0xfb   :  { %840 = vmatpush3.bf16.msra.mxu0 %v839_v1 }
  0xfc   :  { %841 = vmatprep.subr.bf16.mxu0 %v881_v37 }
  0xff   :  { %843 = vmatpush3.bf16.msra.mxu0 %v842_v5 }
 0x100   :  { %844 = vmatprep.subr.bf16.mxu0 %v881_v37 }
 0x103   :  { %846 = vmatpush3.bf16.msra.mxu0 %v845_v8 }
 0x1b1   :  { %v158_v41 = vpop.f32.mrb[4].mxu0 }
 0x1b2   :  { %v679_v42 = vpop.f32.mrb[5].mxu0 }
 0x1b3   :  { %v161_v43 = vpop.f32.mrb[6].mxu0 }
 0x1b4   :  { %v680_v44 = vpop.f32.mrb[7].mxu0 }
 0x1b9   :  { %v685_v45 = vpop.f32.mrb[2].mxu0 }
 0x1ba   :  { %v312_v47 = vadd.f32 %v685_v45, %v161_v43  ;;  %v300_v48 = vpop.f32.mrb[3].mxu0 }
 0x1bb   :  { %v311_v49 = vadd.f32 %v300_v48, %v158_v41 }
 0x1bc   :  { %v318_v50 = vadd.f32 %v604_v46, %v312_v47 }
 0x1bd   :  { %v317_v51 = vadd.f32 %v604_v46, %v311_v49 }
 0x1be   :  { %v320_v53 = vmax.f32 %v318_v50, 0.0 }
 0x1bf   :  { %v319_v52 = vmax.f32 %v317_v51, 0.0 }
 0x1c1   :  { %718 = vmatprep.mubr.f32.mxu1 %v319_v52 }
 0x1c2   :  { %719 = vmatmul.mubr.f32.vlgmr.msra.gmra.mrb[0].mxu1 %v320_v53 }
 0x1c3   :  { %788 = vmatprep.mubr.msk.f32.mxu1 %vm880_vm1, %v879_v3  ;;  %849 = vmatpush3.bf16.msra.mxu1 %v848_v12 }
 0x1c4   :  { %850 = vmatprep.subr.bf16.mxu1 %v881_v37 }
 0x1c7   :  { %852 = vmatpush3.bf16.msra.mxu1 %v851_v14 }
 0x1c8   :  { %853 = vmatprep.subr.bf16.mxu1 %v881_v37 }
 0x1cb   :  { %855 = vmatpush3.bf16.msra.mxu1 %v854_v17 }
 0x1cc   :  { %856 = vmatprep.subr.bf16.mxu1 %v881_v37 }
 0x1cf   :  { %858 = vmatpush3.bf16.msra.mxu1 %v857_v20 }
 0x1d0   :  { %859 = vmatprep.subr.bf16.mxu1 %v881_v37 }
 0x1d3   :  { %861 = vmatpush3.bf16.msra.mxu1 %v860_v23 }
 0x1d4   :  { %862 = vmatprep.subr.bf16.mxu1 %v881_v37 }
 0x1d7   :  { %864 = vmatpush3.bf16.msra.mxu1 %v863_v26 }
 0x1d8   :  { %865 = vmatprep.subr.bf16.mxu1 %v881_v37 }
 0x1db   :  { %867 = vmatpush3.bf16.msra.mxu1 %v866_v29 }
 0x1dc   :  { %868 = vmatprep.subr.bf16.mxu1 %v881_v37 }
 0x1df   :  { %870 = vmatpush3.bf16.msra.mxu1 %v869_v58 }
 0x295   :  { %v720_v31 = vpop.f32.mrb[0].mxu1 }
 0x296   :  { %v397_v32 = vadd.f32 %v720_v31, %v605_v30  ;;  %v391_v33 = vpop.f32.mrb[1].mxu1 }
 0x297   :  { %v392_v35 = vadd.f32 %v605_v30, %v391_v33 }
 0x298   :  { %v401_v36 = vmax.f32 %v397_v32, 0.0 }
 0x299   :  { %v400_v39 = vmax.f32 %v392_v35, 0.0 }
 0x29a   :  { %v407_v40 = vmul.f32 %v606_v34, %v401_v36 }
 0x29b   :  { %v406_v37 = vmul.f32 %v606_v34, %v400_v39 }
 0x29c   :  { %v413_v41 = vadd.f32 %v607_v38, %v407_v40 }
 0x29d   :  { %v412_v42 = vadd.f32 %v607_v38, %v406_v37 }
 0x29e   :  { %v420_v43 = vrot.slane %v413_v41, 4 }
 0x29f   :  { %v414_v44 = vrot.slane %v412_v42, 4 }
 0x2a0   :  { %v421_v45 = vadd.f32 %v420_v43, %v413_v41 }
 0x2a1   :  { %v415_v46 = vadd.f32 %v414_v44, %v412_v42 }
 0x2a2   :  { %v422_v47 = vrot.slane %v421_v45, 2 }
 0x2a3   :  { %v416_v48 = vrot.slane %v415_v46, 2 }
 0x2a4   :  { %v423_v49 = vadd.f32 %v422_v47, %v421_v45 }
 0x2a5   :  { %v417_v50 = vadd.f32 %v416_v48, %v415_v46 }
 0x2a6   :  { %v424_v51 = vrot.slane %v423_v49, 1 }
 0x2a7   :  { %v418_v52 = vrot.slane %v417_v50, 1 }
 0x2a8   :  { %v425_v53 = vadd.f32 %v424_v51, %v423_v49 }
 0x2a9   :  { %v419_v54 = vadd.f32 %v418_v52, %v417_v50 }
 0x2ab   :  { %v433_v55 = vsel %vm432_vm3, %v425_v53, %v419_v54 }
 0x2ac   :  { %754 = vmatmul.mubr.f32.vlgmr.msra.gmra.mrb[8].mxu0 %v433_v55 }
 0x37f   :  { %v501_v60 = vpop.f32.mrb[8].mxu0 }
 0x380   :  { %v502_v61 = vadd.f32 %v608_v59, %v501_v60  ;;  %v755_v62 = vpop.f32.mrb[9].mxu0 }
 0x382   :  { %v505_v63 = vmax.f32 %v502_v61, 0.0 }
 0x384   :  { %789 = vmatmul.mubr.f32.vlgmr.msra.gmra.mrb[2].mxu1 %v505_v63 }
 0x457   :  { %v576_v1 = vpop.f32.mrb[2].mxu1 }
 0x458   :  { %v577_v2 = vadd.f32 %v609_v0, %v576_v1  ;;  %v790_v4 = vpop.f32.mrb[3].mxu1 }
 0x45a   :  { %v581_v5 = vsel %vm580_vm4, %v577_v2, -inf }
 0x45b   :  { %582 = vmax.xlane.f32.xlu0 %v581_v5 }
 0x4e8   :  { %v583_v6 = vpop.xlane.xlu0 %582 }
 0x4e9   :  { %v584_v7 = vsub.f32 %v577_v2, %v583_v6 }
 0x4eb   :  { %v585_v8 = vmul.f32 1.442695, %v584_v7 }
 0x4ed   :  { %875 = vpow2.f32 %v585_v8 }
 0x4f7   :  { %v876_v9 = vpop.eup %875 }
 0x4f8   :  { %v587_v10 = vsel %vm580_vm4, %v876_v9, 0.0 }
 0x4f9   :  { %588 = vadd.xlane.f32.xlu0 %v587_v10 }
 0x586   :  { %v589_v11 = vpop.xlane.xlu0 %588 }
 0x587   :  { %877 = vlog2.f32 %v589_v11 }
 0x591   :  { %v878_v12 = vpop.eup %877 }
 0x592   :  { %v591_v13 = vmul.f32 0.6931472, %v878_v12 }
 0x594   :  { %v592_v14 = vsub.f32 %v584_v7, %v591_v13 }
 0x596   :  { %593 = vst [vmem:[%s1125_s4] sm:$0x3] %v592_v14 }

</bundles_post_ra>
